<compile_context>
chip_gen: v7x
topology: tpu7x:2x2x1
jax: 0.10.0
libtpu: 0.0.40
codegen_flags: <defaults>
</compile_context>

<pallas_src>
import functools

import jax
import jax.numpy as jnp
from jax.experimental import pallas as pl
from jax.experimental.pallas import tpu as pltpu


def _actor_critic_kernel(n_valid,
                         state_ref, placements_t_ref,
                         w_state_t_ref, b_state_col_ref, w1p_t_ref,
                         w2_col_ref, w4_col_ref, b2_ref, b4_ref,
                         prob_ref, v_ref):
    """One PPO step: state (1,D), placements^T (D,N_pad) -> prob (1,N_pad), V (1,1)."""
    H = w1p_t_ref.shape[0]  # 128 hidden units

    # ---- state-only work, computed once (not per action) ------------------
    # Fused first layers of action+value heads: (2H, D) * (1, D) -> lane reduce.
    # VPU multiply + XLU reduce; MXU is reserved for the big placements matmul.
    s_out = jnp.sum(w_state_t_ref[...] * state_ref[...], axis=1, keepdims=True)
    s_out = s_out + b_state_col_ref[...]                       # (2H, 1) = [w1s@s+b1 ; w3@s+b3]
    pre_col = s_out[:H, :]                                     # (H, 1) action hidden, state part
    hv_col = jnp.maximum(s_out[H:, :], 0.0)                    # (H, 1) value hidden (post-ReLU)

    # ---- value head tail: (H,1) dot product on VPU + sublane reduce -------
    v_ref[...] = (jnp.sum(hv_col * w4_col_ref[...], axis=0, keepdims=True)
                  + b4_ref[...])                               # (1, 1)

    # ---- action head, transposed layout: hidden on sublanes, actions on lanes
    h1_t = jnp.dot(w1p_t_ref[...], placements_t_ref[...],
                   preferred_element_type=jnp.float32)          # (H, N_pad) on the MXU
    h1_t = jnp.maximum(h1_t + pre_col, 0.0)                     # broadcast (H,1) over lanes
    score = (jnp.sum(h1_t * w2_col_ref[...], axis=0, keepdims=True)
             + b2_ref[...])                                     # (1, N_pad), lane-dense

    # ---- masked, lane-dense softmax over the N valid actions ---------------
    lane = jax.lax.broadcasted_iota(jnp.int32, score.shape, 1)
    score = jnp.where(lane < n_valid, score, -1e30)
    m = jnp.max(score, axis=1, keepdims=True)                   # (1, 1)
    e = jnp.exp(score - m)                                      # (1, N_pad); pad lanes -> 0
    denom = jnp.sum(e, axis=1, keepdims=True)                   # (1, 1)
    prob_ref[...] = e * pl.reciprocal(denom, approx=False)      # exact recip: keep 1e-5 tol


def prepare_params(params):
    """One-time repack of the nn.Linear params into the kernel's fused/transposed layout."""
    w1, b1, w2, b2, w3, b3, w4, b4 = params        # w: (in, out), b: (1, out)
    D = w3.shape[0]
    w1s, w1p = w1[:D, :], w1[D:, :]                # state / placement halves of action layer-0
    return dict(
        w_state_t=jnp.concatenate([w1s.T, w3.T], axis=0),       # (2H, D) fused state weight
        b_state_col=jnp.concatenate([b1, b3], axis=1).T,         # (2H, 1) fused [b1; b3]
        w1p_t=w1p.T,                                             # (H, D)
        w2_col=w2,                                               # (H, 1)
        w4_col=w4,                                               # (H, 1)
        b2=b2.reshape(1, 1),                                     # (1, 1)
        b4=b4.reshape(1, 1),                                     # (1, 1)
    )


@jax.jit
def actor_critic_forward_batched(states, placements, prep):
    """states: (B, D); placements: (B, N, D). Returns (act_prob (B, N), value (B, 1))."""
    B, N, D = placements.shape
    H = prep["w1p_t"].shape[0]
    N_pad = ((N + 127) // 128) * 128
    f32 = jnp.float32

    state_row = states.astype(f32).reshape(B, 1, D)                      # (B, 1, D)
    p_t = jnp.transpose(placements.astype(f32), (0, 2, 1))               # (B, D, N)
    p_t = jnp.pad(p_t, ((0, 0), (0, 0), (0, N_pad - N)))                 # (B, D, N_pad)

    kernel = functools.partial(_actor_critic_kernel, N)
    const = lambda b: (0, 0)    # weights: same block every grid step -> stay VMEM-resident

    grid_spec = pltpu.PrefetchScalarGridSpec(
        num_scalar_prefetch=0,
        grid=(B,),
        in_specs=[
            pl.BlockSpec((None, 1, D), lambda b: (b, 0, 0)),       # state_row
            pl.BlockSpec((None, D, N_pad), lambda b: (b, 0, 0)),   # placements^T (lane-padded)
            pl.BlockSpec((2 * H, D), const),                       # fused state weight
            pl.BlockSpec((2 * H, 1), const),                       # fused [b1; b3]
            pl.BlockSpec((H, D), const),                           # w1p^T
            pl.BlockSpec((H, 1), const),                           # w2
            pl.BlockSpec((H, 1), const),                           # w4
            pl.BlockSpec((1, 1), const),                           # b2
            pl.BlockSpec((1, 1), const),                           # b4
        ],
        out_specs=(
            pl.BlockSpec((None, 1, N_pad), lambda b: (b, 0, 0)),   # act_prob, lane-dense
            pl.BlockSpec((None, 1, 1), lambda b: (b, 0, 0)),       # value, single element
        ),
    )

    prob, v = pl.pallas_call(
        kernel,
        out_shape=(jax.ShapeDtypeStruct((B, 1, N_pad), f32),
                   jax.ShapeDtypeStruct((B, 1, 1), f32)),
        grid_spec=grid_spec,
        compiler_params=pltpu.CompilerParams(
            dimension_semantics=("parallel",)),   # v7x: split batch across both TensorCores
    )(state_row, p_t,
      prep["w_state_t"], prep["b_state_col"], prep["w1p_t"],
      prep["w2_col"], prep["w4_col"], prep["b2"], prep["b4"])

    return prob[:, 0, :N], v[:, 0, :]


def actor_critic_forward(state, placements, prep):
    """Single step (== get_action_probability). Returns (act_prob (N,), value (1,))."""
    act_prob, value = actor_critic_forward_batched(state[None, :], placements[None, ...], prep)
    return act_prob[0], value[0]


def init_params(key, state_dim, hidden=128):
    """Deterministic synthetic parameters matching the nn.Linear shapes."""
    ks = jax.random.split(key, 8)

    def lin(kw, kb, fan_in, fan_out):
        bound = 1.0 / jnp.sqrt(fan_in)
        w = jax.random.uniform(kw, (fan_in, fan_out), jnp.float32, -bound, bound)
        b = jax.random.uniform(kb, (1, fan_out), jnp.float32, -bound, bound)
        return w, b

    w1, b1 = lin(ks[0], ks[1], state_dim * 2, hidden)   # action_layer[0]
    w2, b2 = lin(ks[2], ks[3], hidden, 1)               # action_layer[2]
    w3, b3 = lin(ks[4], ks[5], state_dim, hidden)       # value_layer[0]
    w4, b4 = lin(ks[6], ks[7], hidden, 1)               # value_layer[2]
    return (w1, b1, w2, b2, w3, b3, w4, b4)


def reference_forward(state, placements, params):
    """Plain-JAX reference replicating the PyTorch math."""
    w1, b1, w2, b2, w3, b3, w4, b4 = params
    N, D = placements.shape
    states = jnp.broadcast_to(state[None, :], (N, D))
    xcat = jnp.concatenate([states, placements], axis=-1)
    score = (jnp.maximum(xcat @ w1 + b1, 0.0) @ w2 + b2)[:, 0]
    v = jnp.maximum(states @ w3 + b3, 0.0) @ w4 + b4
    return jax.nn.softmax(score, axis=0), v[0, :]


if __name__ == "__main__":
    key = jax.random.PRNGKey(0)
    k_state, k_place, k_params, k_bstate, k_bplace = jax.random.split(key, 5)

    STATE_DIM = 32       # small synthetic state size
    N_ACTIONS = 44       # number of candidate placements (len(DATA) == 44)

    state = jax.random.normal(k_state, (STATE_DIM,), jnp.float32)
    placements = jax.random.normal(k_place, (N_ACTIONS, STATE_DIM), jnp.float32)
    params = init_params(k_params, STATE_DIM)
    prep = prepare_params(params)

    # ---- single step (== get_action_probability) ----
    act_prob, value = actor_critic_forward(state, placements, prep)
    jax.block_until_ready((act_prob, value))

    ref_prob, ref_value = reference_forward(state, placements, params)
    assert act_prob.shape == (N_ACTIONS,)
    assert value.shape == (1,)
    assert jnp.allclose(act_prob, ref_prob, atol=1e-5, rtol=1e-5)
    assert jnp.allclose(value, ref_value, atol=1e-5, rtol=1e-5)
    assert jnp.allclose(jnp.sum(act_prob), 1.0, atol=1e-5)

    # ---- batched steps (== eval_values segments); weights stay VMEM-resident across the grid ----
    B = 4
    states_b = jax.random.normal(k_bstate, (B, STATE_DIM), jnp.float32)
    placements_b = jax.random.normal(k_bplace, (B, N_ACTIONS, STATE_DIM), jnp.float32)
    probs_b, values_b = actor_critic_forward_batched(states_b, placements_b, prep)
    jax.block_until_ready((probs_b, values_b))
    for b in range(B):
        rp, rv = reference_forward(states_b[b], placements_b[b], params)
        assert jnp.allclose(probs_b[b], rp, atol=1e-5, rtol=1e-5)
        assert jnp.allclose(values_b[b], rv, atol=1e-5, rtol=1e-5)

    # TODO(synk): Categorical sampling / log_prob / entropy and Memory bookkeeping
    # (act / evaluate) are host-side control logic and are not part of this kernel.

    print("KERNEL_OK")
</pallas_src>

<mosaic_0001>
module attributes {stable_mosaic.version = 11 : i64} {
  func.func @_actor_critic_kernel(%arg0: i32, %arg1: memref<1x1x32xf32, #tpu.memory_space<vmem>>, %arg2: memref<1x32x128xf32, #tpu.memory_space<vmem>>, %arg3: memref<256x32xf32, #tpu.memory_space<vmem>>, %arg4: memref<256x1xf32, #tpu.memory_space<vmem>>, %arg5: memref<128x32xf32, #tpu.memory_space<vmem>>, %arg6: memref<128x1xf32, #tpu.memory_space<vmem>>, %arg7: memref<128x1xf32, #tpu.memory_space<vmem>>, %arg8: memref<1x1xf32, #tpu.memory_space<vmem>>, %arg9: memref<1x1xf32, #tpu.memory_space<vmem>>, %arg10: memref<1x1x128xf32, #tpu.memory_space<vmem>>, %arg11: memref<1x1x1xf32, #tpu.memory_space<vmem>>) attributes {dimension_semantics = [#tpu.dimension_semantics<parallel>], iteration_bounds = array<i64: 1>, scalar_prefetch = 0 : i64, scratch_operands = 0 : i64, tpu.core_type = #tpu.core_type<tc>, window_params = [{transform_indices = @transform_0, window_bounds = array<i64: 1, 1, 32>}, {transform_indices = @transform_1, window_bounds = array<i64: 1, 32, 128>}, {pipeline_mode = #tpu.pipeline_mode<synchronous>, transform_indices = @transform_2, window_bounds = array<i64: 256, 32>}, {pipeline_mode = #tpu.pipeline_mode<synchronous>, transform_indices = @transform_3, window_bounds = array<i64: 256, 1>}, {pipeline_mode = #tpu.pipeline_mode<synchronous>, transform_indices = @transform_4, window_bounds = array<i64: 128, 32>}, {pipeline_mode = #tpu.pipeline_mode<synchronous>, transform_indices = @transform_5, window_bounds = array<i64: 128, 1>}, {pipeline_mode = #tpu.pipeline_mode<synchronous>, transform_indices = @transform_6, window_bounds = array<i64: 128, 1>}, {pipeline_mode = #tpu.pipeline_mode<synchronous>, transform_indices = @transform_7, window_bounds = array<i64: 1, 1>}, {pipeline_mode = #tpu.pipeline_mode<synchronous>, transform_indices = @transform_8, window_bounds = array<i64: 1, 1>}, {transform_indices = @transform_9, window_bounds = array<i64: 1, 1, 128>}, {transform_indices = @transform_10, window_bounds = array<i64: 1, 1, 1>}]} {
    %c0 = arith.constant 0 : index
    %c0_0 = arith.constant 0 : index
    %0 = vector.load %arg3[%c0, %c0_0] : memref<256x32xf32, #tpu.memory_space<vmem>>, vector<256x32xf32>
    %c0_1 = arith.constant 0 : index
    %c0_2 = arith.constant 0 : index
    %c0_3 = arith.constant 0 : index
    %1 = vector.load %arg1[%c0_1, %c0_2, %c0_3] : memref<1x1x32xf32, #tpu.memory_space<vmem>>, vector<1x1x32xf32>
    %2 = vector.shape_cast %1 : vector<1x1x32xf32> to vector<1x32xf32>
    %3 = vector.broadcast %2 : vector<1x32xf32> to vector<256x32xf32>
    %4 = arith.mulf %0, %3 : vector<256x32xf32>
    %cst = arith.constant dense<0.000000e+00> : vector<256xf32>
    %5 = vector.multi_reduction <add>, %4, %cst [1] : vector<256x32xf32> to vector<256xf32>
    %6 = vector.shape_cast %5 : vector<256xf32> to vector<256x1xf32>
    %c0_4 = arith.constant 0 : index
    %c0_5 = arith.constant 0 : index
    %7 = vector.load %arg4[%c0_4, %c0_5] : memref<256x1xf32, #tpu.memory_space<vmem>>, vector<256x1xf32>
    %8 = arith.addf %6, %7 : vector<256x1xf32>
    %9 = vector.extract_strided_slice %8 {offsets = [0, 0], sizes = [128, 1], strides = [1, 1]} : vector<256x1xf32> to vector<128x1xf32>
    %10 = vector.extract_strided_slice %8 {offsets = [128, 0], sizes = [128, 1], strides = [1, 1]} : vector<256x1xf32> to vector<128x1xf32>
    %cst_6 = arith.constant 0.000000e+00 : f32
    %11 = vector.broadcast %cst_6 : f32 to vector<128x1xf32>
    %12 = arith.maximumf %10, %11 : vector<128x1xf32>
    %c0_7 = arith.constant 0 : index
    %c0_8 = arith.constant 0 : index
    %13 = vector.load %arg7[%c0_7, %c0_8] : memref<128x1xf32, #tpu.memory_space<vmem>>, vector<128x1xf32>
    %14 = arith.mulf %12, %13 : vector<128x1xf32>
    %cst_9 = arith.constant dense<0.000000e+00> : vector<1xf32>
    %15 = vector.multi_reduction <add>, %14, %cst_9 [0] : vector<128x1xf32> to vector<1xf32>
    %16 = vector.shape_cast %15 : vector<1xf32> to vector<1x1xf32>
    %c0_10 = arith.constant 0 : index
    %c0_11 = arith.constant 0 : index
    %17 = vector.load %arg9[%c0_10, %c0_11] : memref<1x1xf32, #tpu.memory_space<vmem>>, vector<1x1xf32>
    %18 = arith.addf %16, %17 : vector<1x1xf32>
    %c0_12 = arith.constant 0 : index
    %c0_13 = arith.constant 0 : index
    %c0_14 = arith.constant 0 : index
    %19 = vector.load %arg11[%c0_12, %c0_13, %c0_14] : memref<1x1x1xf32, #tpu.memory_space<vmem>>, vector<1x1x1xf32>
    %20 = vector.shape_cast %19 : vector<1x1x1xf32> to vector<1x1xf32>
    %21 = vector.shape_cast %18 : vector<1x1xf32> to vector<1x1x1xf32>
    tpu.vector_store %arg11[%c0_12, %c0_13, %c0_14], %21 {strides = array<i32>} : memref<1x1x1xf32, #tpu.memory_space<vmem>>, vector<1x1x1xf32>,
    %c0_15 = arith.constant 0 : index
    %c0_16 = arith.constant 0 : index
    %22 = vector.load %arg5[%c0_15, %c0_16] : memref<128x32xf32, #tpu.memory_space<vmem>>, vector<128x32xf32>
    %c0_17 = arith.constant 0 : index
    %c0_18 = arith.constant 0 : index
    %c0_19 = arith.constant 0 : index
    %23 = vector.load %arg2[%c0_17, %c0_18, %c0_19] : memref<1x32x128xf32, #tpu.memory_space<vmem>>, vector<1x32x128xf32>
    %24 = vector.shape_cast %23 : vector<1x32x128xf32> to vector<32x128xf32>
    %cst_20 = arith.constant dense<0.000000e+00> : vector<128x128xf32>
    %25 = tpu.matmul %22, %24, %cst_20 {dimension_numbers = #tpu.dot_dimension_numbers<[1], [0], [0], [1], [0, 0, 1, 1], [], []>} : vector<128x32xf32>, vector<32x128xf32>, vector<128x128xf32> -> vector<128x128xf32>
    %26 = vector.broadcast %9 : vector<128x1xf32> to vector<128x128xf32>
    %27 = arith.addf %25, %26 : vector<128x128xf32>
    %cst_21 = arith.constant 0.000000e+00 : f32
    %28 = vector.broadcast %cst_21 : f32 to vector<128x128xf32>
    %29 = arith.maximumf %27, %28 : vector<128x128xf32>
    %c0_22 = arith.constant 0 : index
    %c0_23 = arith.constant 0 : index
    %30 = vector.load %arg6[%c0_22, %c0_23] : memref<128x1xf32, #tpu.memory_space<vmem>>, vector<128x1xf32>
    %31 = vector.broadcast %30 : vector<128x1xf32> to vector<128x128xf32>
    %32 = arith.mulf %29, %31 : vector<128x128xf32>
    %cst_24 = arith.constant dense<0.000000e+00> : vector<128xf32>
    %33 = vector.multi_reduction <add>, %32, %cst_24 [0] : vector<128x128xf32> to vector<128xf32>
    %34 = vector.shape_cast %33 : vector<128xf32> to vector<1x128xf32>
    %c0_25 = arith.constant 0 : index
    %c0_26 = arith.constant 0 : index
    %35 = vector.load %arg8[%c0_25, %c0_26] : memref<1x1xf32, #tpu.memory_space<vmem>>, vector<1x1xf32>
    %36 = vector.broadcast %35 : vector<1x1xf32> to vector<1x128xf32>
    %37 = arith.addf %34, %36 : vector<1x128xf32>
    %38 = tpu.iota {dimensions = array<i32: 1>} : vector<1x128xi32>
    %c44_i32 = arith.constant 44 : i32
    %39 = vector.broadcast %c44_i32 : i32 to vector<1x128xi32>
    %40 = arith.cmpi slt, %38, %39 : vector<1x128xi32>
    %cst_27 = arith.constant -1.000000e+30 : f32
    %41 = vector.broadcast %cst_27 : f32 to vector<1x128xf32>
    %42 = arith.select %40, %37, %41 : vector<1x128xi1>, vector<1x128xf32>
    %cst_28 = arith.constant dense<0xFF800000> : vector<1xf32>
    %43 = vector.multi_reduction <maximumf>, %42, %cst_28 [1] : vector<1x128xf32> to vector<1xf32>
    %44 = vector.shape_cast %43 : vector<1xf32> to vector<1x1xf32>
    %45 = vector.broadcast %44 : vector<1x1xf32> to vector<1x128xf32>
    %46 = arith.subf %42, %45 : vector<1x128xf32>
    %47 = math.exp %46 : vector<1x128xf32>
    %cst_29 = arith.constant dense<0.000000e+00> : vector<1xf32>
    %48 = vector.multi_reduction <add>, %47, %cst_29 [1] : vector<1x128xf32> to vector<1xf32>
    %49 = vector.shape_cast %48 : vector<1xf32> to vector<1x1xf32>
    %50 = tpu.reciprocal %49 : vector<1x1xf32> -> vector<1x1xf32>
    %51 = vector.broadcast %50 : vector<1x1xf32> to vector<1x128xf32>
    %52 = arith.mulf %47, %51 : vector<1x128xf32>
    %c0_30 = arith.constant 0 : index
    %c0_31 = arith.constant 0 : index
    %c0_32 = arith.constant 0 : index
    %53 = vector.load %arg10[%c0_30, %c0_31, %c0_32] : memref<1x1x128xf32, #tpu.memory_space<vmem>>, vector<1x1x128xf32>
    %54 = vector.shape_cast %53 : vector<1x1x128xf32> to vector<1x128xf32>
    %55 = vector.shape_cast %52 : vector<1x128xf32> to vector<1x1x128xf32>
    tpu.vector_store %arg10[%c0_30, %c0_31, %c0_32], %55 {strides = array<i32>} : memref<1x1x128xf32, #tpu.memory_space<vmem>>, vector<1x1x128xf32>,
    return
  }
  func.func @transform_0(%arg0: i32) -> (i32, i32, i32) {
    %c0_i32 = arith.constant 0 : i32
    %c0_i32_0 = arith.constant 0 : i32
    %c0_i32_1 = arith.constant 0 : i32
    return %arg0, %c0_i32, %c0_i32_0 : i32, i32, i32
  }
  func.func @transform_1(%arg0: i32) -> (i32, i32, i32) {
    %c0_i32 = arith.constant 0 : i32
    %c0_i32_0 = arith.constant 0 : i32
    %c0_i32_1 = arith.constant 0 : i32
    return %arg0, %c0_i32, %c0_i32_0 : i32, i32, i32
  }
  func.func @transform_2(%arg0: i32) -> (i32, i32) {
    %c0_i32 = arith.constant 0 : i32
    %c0_i32_0 = arith.constant 0 : i32
    %c0_i32_1 = arith.constant 0 : i32
    return %c0_i32, %c0_i32_0 : i32, i32
  }
  func.func @transform_3(%arg0: i32) -> (i32, i32) {
    %c0_i32 = arith.constant 0 : i32
    %c0_i32_0 = arith.constant 0 : i32
    %c0_i32_1 = arith.constant 0 : i32
    return %c0_i32, %c0_i32_0 : i32, i32
  }
  func.func @transform_4(%arg0: i32) -> (i32, i32) {
    %c0_i32 = arith.constant 0 : i32
    %c0_i32_0 = arith.constant 0 : i32
    %c0_i32_1 = arith.constant 0 : i32
    return %c0_i32, %c0_i32_0 : i32, i32
  }
  func.func @transform_5(%arg0: i32) -> (i32, i32) {
    %c0_i32 = arith.constant 0 : i32
    %c0_i32_0 = arith.constant 0 : i32
    %c0_i32_1 = arith.constant 0 : i32
    return %c0_i32, %c0_i32_0 : i32, i32
  }
  func.func @transform_6(%arg0: i32) -> (i32, i32) {
    %c0_i32 = arith.constant 0 : i32
    %c0_i32_0 = arith.constant 0 : i32
    %c0_i32_1 = arith.constant 0 : i32
    return %c0_i32, %c0_i32_0 : i32, i32
  }
  func.func @transform_7(%arg0: i32) -> (i32, i32) {
    %c0_i32 = arith.constant 0 : i32
    %c0_i32_0 = arith.constant 0 : i32
    %c0_i32_1 = arith.constant 0 : i32
    return %c0_i32, %c0_i32_0 : i32, i32
  }
  func.func @transform_8(%arg0: i32) -> (i32, i32) {
    %c0_i32 = arith.constant 0 : i32
    %c0_i32_0 = arith.constant 0 : i32
    %c0_i32_1 = arith.constant 0 : i32
    return %c0_i32, %c0_i32_0 : i32, i32
  }
  func.func @transform_9(%arg0: i32) -> (i32, i32, i32) {
    %c0_i32 = arith.constant 0 : i32
    %c0_i32_0 = arith.constant 0 : i32
    %c0_i32_1 = arith.constant 0 : i32
    return %arg0, %c0_i32, %c0_i32_0 : i32, i32, i32
  }
  func.func @transform_10(%arg0: i32) -> (i32, i32, i32) {
    %c0_i32 = arith.constant 0 : i32
    %c0_i32_0 = arith.constant 0 : i32
    %c0_i32_1 = arith.constant 0 : i32
    return %arg0, %c0_i32, %c0_i32_0 : i32, i32, i32
  }
}

</mosaic_0001>

<bundles_post_ra>
// kernel: actor_critic_forward_batched.1
= control target key start
LH: loop header
LB: loop body
LE: loop exit
PB: predicated region body
PF: predicated region fallthrough
CT: control target
= control target key end

     0   :  { %s1529_s0 = inlined_call_operand.vmem [shape: f32[1,1,32], index: 0, kind: input, shape index: {}]   ;;  %s1530_s1 = inlined_call_operand.vmem [shape: f32[1,32,128], index: 1, kind: input, shape index: {}]   ;;  %s1531_s2 = inlined_call_operand.vmem [shape: f32[256,32], index: 2, kind: input, shape index: {}]   ;;  %s1532_s3 = inlined_call_operand.vmem [shape: f32[256,1], index: 3, kind: input, shape index: {}]   ;;  %s1533_s4 = inlined_call_operand.vmem [shape: f32[128,32], index: 4, kind: input, shape index: {}]   ;;  %s1534_s5 = inlined_call_operand.vmem [shape: f32[128,1], index: 5, kind: input, shape index: {}]   ;;  %s1535_s6 = inlined_call_operand.vmem [shape: f32[128,1], index: 6, kind: input, shape index: {}]   ;;  %s1536_s7 = inlined_call_operand.<no memory space> [shape: f32[1,1], index: 7, kind: input, shape index: {}]   ;;  %s1537_s9 = inlined_call_operand.vmem [shape: f32[1,1,128], index: 9, kind: output, shape index: {0}]   ;;  %s1538_s10 = inlined_call_operand.hbm [shape: f32[1,1,1], index: 10, kind: output, shape index: {1}]   ;;  %s1539_s8 = inlined_call_operand.<no memory space> [shape: f32[1,1], index: 8, kind: input, shape index: {}]  }
   0x1   :  { %v16_v0 = vstv %s1536_s7  ;;  %v18_v1 = vstv %s1539_s8 }
   0x2   :  { %17 = vst [vmem:[#allocation2] sm:$0x1] %v16_v0  ;;  %19 = vst [vmem:[#allocation3] sm:$0x1] %v18_v1 }
   0x3   :  { %v39_v2 = vld [vmem:[%s1531_s2] sm:$0xff]  ;;  %vm110_vm0 = vcmask 261120   ;;  %v40_v4 = vld [vmem:[%s1531_s2 + $0x8] sm:$0xff]  ;;  %v41_v7 = vld [vmem:[%s1531_s2 + $0x10] sm:$0xff]  ;;  %v959_v9 = vmov 0  }
   0x4   :  { %v1028_v3 = vld [vmem:[%s1529_s0] ss:$0 sm:$0xff]  ;;  %v42_v8 = vld [vmem:[%s1531_s2 + $0x18] sm:$0xff]  ;;  %930 = vset.pattern.permute.xlu0 %v959_v9  ;;  %929 = vset.pattern.permute.xlu1 %v959_v9  ;;  %v44_v14 = vld [vmem:[%s1531_s2 + $0x28] sm:$0xff] }
   0x5   :  { %v78_v5 = vmul.f32 %v1028_v3, %v39_v2  ;;  %v79_v6 = vmul.f32 %v1028_v3, %v40_v4  ;;  %v80_v10 = vmul.f32 %v1028_v3, %v41_v7  ;;  %v81_v11 = vmul.f32 %v1028_v3, %v42_v8  ;;  %v43_v12 = vld [vmem:[%s1531_s2 + $0x20] sm:$0xff]  ;;  %v378_v19 = vld [vmem:[%s1530_s1 + $0x8] sm:$0xff]  ;;  %v379_v20 = vld [vmem:[%s1530_s1 + $0x10] sm:$0xff] }
   0x6   :  { %v377_v16 = vld [vmem:[%s1530_s1] sm:$0xff]  ;;  %v82_v18 = vmul.f32 %v1028_v3, %v43_v12  ;;  %v83_v22 = vmul.f32 %v1028_v3, %v44_v14  ;;  %v45_v23 = vld [vmem:[%s1531_s2 + $0x30] sm:$0xff]  ;;  %v380_v24 = vld [vmem:[%s1530_s1 + $0x18] sm:$0xff] }
   0x7   :  { %v111_v13 = vsel %vm110_vm0, %v78_v5, 0.0  ;;  %v117_v15 = vsel %vm110_vm0, %v80_v10, 0.0  ;;  %v114_v17 = vsel %vm110_vm0, %v79_v6, 0.0  ;;  %v120_v21 = vsel %vm110_vm0, %v81_v11, 0.0  ;;  %v361_v25 = vld [vmem:[%s1533_s4] sm:$0xff]  ;;  %v46_v26 = vld [vmem:[%s1531_s2 + $0x38] sm:$0xff] }
   0x8   :  { %112 = vadd.xlane.f32.xlu0 %v111_v13  ;;  %118 = vadd.xlane.f32.xlu1 %v117_v15  ;;  %v915_v27 = vpack.c.bf16 %v378_v19, %v377_v16  ;;  %v919_v28 = vpack.c.bf16 %v380_v24, %v379_v20  ;;  %v123_v29 = vsel %vm110_vm0, %v82_v18, 0.0  ;;  %v84_v30 = vmul.f32 %v1028_v3, %v45_v23  ;;  %v47_v33 = vld [vmem:[%s1531_s2 + $0x40] sm:$0xff]  ;;  %v48_v35 = vld [vmem:[%s1531_s2 + $0x48] sm:$0xff]  ;;  %v49_v40 = vld [vmem:[%s1531_s2 + $0x50] sm:$0xff] }
   0x9   :  { %891 = vmatprep.mubr.msk.f32.mxu0 %vm110_vm0, %v361_v25  ;;  %v126_v31 = vsel %vm110_vm0, %v83_v22, 0.0  ;;  %v85_v32 = vmul.f32 %v1028_v3, %v46_v26  ;;  %v369_v34 = vld [vmem:[%s1533_s4 + $0x40] sm:$0xff]  ;;  %v86_v37 = vmul.f32 %v1028_v3, %v47_v33  ;;  %v87_v39 = vmul.f32 %v1028_v3, %v48_v35  ;;  %v50_v41 = vld [vmem:[%s1531_s2 + $0x58] sm:$0xff]  ;;  %v362_v42 = vld [vmem:[%s1533_s4 + $0x8] sm:$0xff] }
   0xa   :  { %916 = vmatprep.subr.bf16.mxu0 %v915_v27  ;;  %923 = vmatprep.subr.bf16.mxu1 %v915_v27  ;;  %v129_v36 = vsel %vm110_vm0, %v84_v30, 0.0  ;;  %v363_v43 = vld [vmem:[%s1533_s4 + $0x10] sm:$0xff]  ;;  %v370_v44 = vld [vmem:[%s1533_s4 + $0x48] sm:$0xff] }
   0xb   :  { %918 = vmatpush3.bf16.msra.mxu0 %v915_v27  ;;  %925 = vmatpush3.bf16.msra.mxu1 %v915_v27  ;;  %v132_v38 = vsel %vm110_vm0, %v85_v32, 0.0 }
   0xc   :  { %115 = vadd.xlane.f32.xlu0 %v114_v17  ;;  %121 = vadd.xlane.f32.xlu1 %v120_v21 }
   0xd   :  { %920 = vmatprep.subr.bf16.mxu0 %v919_v28  ;;  %924 = vmatprep.subr.bf16.mxu1 %v919_v28 }
   0xe   :  { %903 = vmatprep.mubr.msk.f32.mxu1 %vm110_vm0, %v369_v34 }
   0xf   :  { %922 = vmatpush3.bf16.msra.mxu0 %v919_v28  ;;  %926 = vmatpush3.bf16.msra.mxu1 %v919_v28 }
  0x10   :  { %124 = vadd.xlane.f32.xlu0 %v123_v29  ;;  %127 = vadd.xlane.f32.xlu1 %v126_v31 }
  0x11   :  { %20 = vsyncpa [#allocation5], 0  ;;  %v371_v45 = vld [vmem:[%s1533_s4 + $0x50] sm:$0xff]  ;;  %v135_v46 = vsel %vm110_vm0, %v86_v37, 0.0  ;;  %v88_v47 = vmul.f32 %v1028_v3, %v49_v40  ;;  %v138_v48 = vsel %vm110_vm0, %v87_v39, 0.0  ;;  %v89_v49 = vmul.f32 %v1028_v3, %v50_v41  ;;  %v51_v50 = vld [vmem:[%s1531_s2 + $0x60] sm:$0xff] }
  0x12   :  { %892 = vmatmul.mubr.msk.f32.vlgmr.msra.gmra.mrb[0].mxu0 %vm110_vm0, %v362_v42  ;;  %v364_v51 = vld [vmem:[%s1533_s4 + $0x18] sm:$0xff]  ;;  %904 = vmatmul.mubr.msk.f32.vlgmr.msra.gmra.mrb[0].mxu1 %vm110_vm0, %v370_v44  ;;  %v52_v52 = vld [vmem:[%s1531_s2 + $0x68] sm:$0xff]  ;;  %v365_v53 = vld [vmem:[%s1533_s4 + $0x20] sm:$0xff]  ;;  %v90_v57 = vmul.f32 %v1028_v3, %v51_v50  ;;  %vm319_vm2 = vcmask 7168   ;;  %vm359_vm3 = vcmask 0  }
  0x13   :  { %894 = vmatprep.mubr.msk.f32.mxu0 %vm110_vm0, %v363_v43  ;;  %906 = vmatprep.mubr.msk.f32.mxu1 %vm110_vm0, %v371_v45  ;;  %v372_v54 = vld [vmem:[%s1533_s4 + $0x58] sm:$0xff]  ;;  %v373_v55 = vld [vmem:[%s1533_s4 + $0x60] sm:$0xff]  ;;  %v141_v56 = vsel %vm110_vm0, %v88_v47, 0.0  ;;  %v144_v58 = vsel %vm110_vm0, %v89_v49, 0.0  ;;  %v91_v59 = vmul.f32 %v1028_v3, %v52_v52  ;;  %v53_v60 = vld [vmem:[%s1531_s2 + $0x70] sm:$0xff] }
  0x14   :  { %130 = vadd.xlane.f32.xlu0 %v129_v36  ;;  %133 = vadd.xlane.f32.xlu1 %v132_v38  ;;  %v366_v61 = vld [vmem:[%s1533_s4 + $0x28] sm:$0xff]  ;;  %v54_v62 = vld [vmem:[%s1531_s2 + $0x78] sm:$0xff]  ;;  %v367_v63 = vld [vmem:[%s1533_s4 + $0x30] sm:$0xff]  ;;  %v147_v2 = vsel %vm110_vm0, %v90_v57, 0.0  ;;  %v92_v4 = vmul.f32 %v1028_v3, %v53_v60 }
  0x15   :  { %v374_v0 = vld [vmem:[%s1533_s4 + $0x68] sm:$0xff]  ;;  %v375_v1 = vld [vmem:[%s1533_s4 + $0x70] sm:$0xff]  ;;  %v150_v5 = vsel %vm110_vm0, %v91_v59, 0.0  ;;  %v93_v6 = vmul.f32 %v1028_v3, %v54_v62  ;;  %v368_v7 = vld [vmem:[%s1533_s4 + $0x38] sm:$0xff] }
  0x16   :  { %895 = vmatmul.mubr.msk.f32.gmra.mrb[2].mxu0 %vm110_vm0, %v364_v51  ;;  %907 = vmatmul.mubr.msk.f32.gmra.mrb[2].mxu1 %vm110_vm0, %v372_v54  ;;  %v376_v8 = vld [vmem:[%s1533_s4 + $0x78] sm:$0xff]  ;;  %v153_v9 = vsel %vm110_vm0, %v92_v4, 0.0  ;;  %v670_v11 = vld [vmem:[%s1534_s5] sm:$0xff]  ;;  %v671_v13 = vld [vmem:[%s1534_s5 + $0x8] sm:$0xff] }
  0x17   :  { %897 = vmatprep.mubr.msk.f32.mxu0 %vm110_vm0, %v365_v53  ;;  %909 = vmatprep.mubr.msk.f32.mxu1 %vm110_vm0, %v373_v55  ;;  %v156_v10 = vsel %vm110_vm0, %v93_v6, 0.0  ;;  %v673_v12 = vld [vmem:[%s1534_s5 + $0x18] sm:$0xff]  ;;  %v674_v14 = vld [vmem:[%s1534_s5 + $0x20] sm:$0xff]  ;;  %v672_v15 = vld [vmem:[%s1534_s5 + $0x10] sm:$0xff] }
  0x18   :  { %136 = vadd.xlane.f32.xlu0 %v135_v46  ;;  %139 = vadd.xlane.f32.xlu1 %v138_v48  ;;  %v675_v16 = vld [vmem:[%s1534_s5 + $0x28] sm:$0xff]  ;;  %v676_v17 = vld [vmem:[%s1534_s5 + $0x30] sm:$0xff]  ;;  %v207_v18 = vld [vmem:[%s1532_s3] sm:$0xff] }
  0x19   :  { %v208_v21 = vld [vmem:[%s1532_s3 + $0x8] sm:$0xff]  ;;  %v677_v24 = vld [vmem:[%s1534_s5 + $0x38] sm:$0xff]  ;;  %v209_v25 = vld [vmem:[%s1532_s3 + $0x10] sm:$0xff] }
  0x1a   :  { %898 = vmatmul.mubr.msk.f32.gmra.mrb[4].mxu0 %vm110_vm0, %v366_v61  ;;  %910 = vmatmul.mubr.msk.f32.gmra.mrb[4].mxu1 %vm110_vm0, %v374_v0  ;;  %v678_v28 = vld [vmem:[%s1534_s5 + $0x40] sm:$0xff]  ;;  %v210_v29 = vld [vmem:[%s1532_s3 + $0x18] sm:$0xff]  ;;  %v679_v32 = vld [vmem:[%s1534_s5 + $0x48] sm:$0xff] }
  0x1b   :  { %900 = vmatprep.mubr.msk.f32.mxu0 %vm110_vm0, %v367_v63  ;;  %912 = vmatprep.mubr.msk.f32.mxu1 %vm110_vm0, %v375_v1  ;;  %v211_v33 = vld [vmem:[%s1532_s3 + $0x20] sm:$0xff]  ;;  %v680_v36 = vld [vmem:[%s1534_s5 + $0x50] sm:$0xff]  ;;  %v212_v37 = vld [vmem:[%s1532_s3 + $0x28] sm:$0xff] }
  0x1c   :  { %142 = vadd.xlane.f32.xlu0 %v141_v56  ;;  %145 = vadd.xlane.f32.xlu1 %v144_v58  ;;  %v681_v40 = vld [vmem:[%s1534_s5 + $0x58] sm:$0xff]  ;;  %v213_v41 = vld [vmem:[%s1532_s3 + $0x30] sm:$0xff]  ;;  %v682_v44 = vld [vmem:[%s1534_s5 + $0x60] sm:$0xff] }
  0x1d   :  { %v214_v45 = vld [vmem:[%s1532_s3 + $0x38] sm:$0xff]  ;;  %v683_v48 = vld [vmem:[%s1534_s5 + $0x68] sm:$0xff]  ;;  %v215_v49 = vld [vmem:[%s1532_s3 + $0x40] sm:$0xff] }
  0x1e   :  { %901 = vmatmul.mubr.msk.f32.gmra.mrb[6].mxu0 %vm110_vm0, %v368_v7  ;;  %913 = vmatmul.mubr.msk.f32.gmra.mrb[6].mxu1 %vm110_vm0, %v376_v8  ;;  %v685_v52 = vld [vmem:[%s1534_s5 + $0x78] sm:$0xff]  ;;  %v216_v53 = vld [vmem:[%s1532_s3 + $0x48] sm:$0xff]  ;;  %v217_v56 = vld [vmem:[%s1532_s3 + $0x50] sm:$0xff] }
  0x1f   :  { %v218_v59 = vld [vmem:[%s1532_s3 + $0x58] sm:$0xff]  ;;  %v219_v62 = vld [vmem:[%s1532_s3 + $0x60] sm:$0xff]  ;;  %v220_v1 = vld [vmem:[%s1532_s3 + $0x68] sm:$0xff] }
  0x20   :  { %148 = vadd.xlane.f32.xlu0 %v147_v2  ;;  %151 = vadd.xlane.f32.xlu1 %v150_v5  ;;  %v221_v5 = vld [vmem:[%s1532_s3 + $0x70] sm:$0xff]  ;;  %v222_v8 = vld [vmem:[%s1532_s3 + $0x78] sm:$0xff] }
  0x24   :  { %154 = vadd.xlane.f32.xlu0 %v153_v9  ;;  %157 = vadd.xlane.f32.xlu1 %v156_v10 }
  0x35   :  { %688 = vperm.xlu1 %929, %v670_v11   ;;  %v684_v11 = vld [vmem:[%s1534_s5 + $0x70] sm:$0xff] }
  0x39   :  { %693 = vperm.xlu1 %929, %v671_v13  }
  0x3a   :  { %703 = vperm.xlu0 %930, %v673_v12   ;;  %v803_v12 = vld [vmem:[#allocation2] sm:$0x1] }
  0x3d   :  { %698 = vperm.xlu1 %929, %v672_v15  }
  0x3e   :  { %708 = vperm.xlu0 %930, %v674_v14  }
  0x42   :  { %713 = vperm.xlu0 %930, %v675_v16  }
  0x46   :  { %718 = vperm.xlu0 %930, %v676_v17  }
  0x95   :  { %v113_v19 = vpop.xlane.xlu0 %112  ;;  %v119_v22 = vpop.xlane.xlu1 %118 }
  0x96   :  { %v239_v20 = vadd.f32 %v207_v18, %v113_v19  ;;  %v241_v27 = vadd.f32 %v209_v25, %v119_v22 }
  0x98   :  { %383 = vperm.xlu0 %930, %v239_v20  }
  0x99   :  { %v116_v23 = vpop.xlane.xlu0 %115  ;;  %v122_v30 = vpop.xlane.xlu1 %121 }
  0x9a   :  { %v240_v26 = vadd.f32 %v208_v21, %v116_v23  ;;  %v242_v31 = vadd.f32 %v210_v29, %v122_v30  ;;  %v55_v29 = vld [vmem:[%s1531_s2 + $0x80] sm:$0xff] }
  0x9b   :  { %v94_v30 = vmul.f32 %v1028_v3, %v55_v29 }
  0x9c   :  { %723 = vperm.xlu0 %930, %v677_v24   ;;  %388 = vperm.xlu1 %929, %v240_v26  }
  0x9d   :  { %v125_v34 = vpop.xlane.xlu0 %124  ;;  %v128_v38 = vpop.xlane.xlu1 %127 }
  0x9e   :  { %v243_v35 = vadd.f32 %v211_v33, %v125_v34  ;;  %v244_v39 = vadd.f32 %v212_v37, %v128_v38  ;;  %v60_v34 = vld [vmem:[%s1531_s2 + $0xa8] sm:$0xff]  ;;  %v62_v38 = vld [vmem:[%s1531_s2 + $0xb8] sm:$0xff] }
  0x9f   :  { %v99_v37 = vmul.f32 %v1028_v3, %v60_v34 }
  0xa0   :  { %728 = vperm.xlu0 %930, %v678_v28   ;;  %393 = vperm.xlu1 %929, %v241_v27  }
  0xa1   :  { %v131_v42 = vpop.xlane.xlu0 %130  ;;  %v134_v46 = vpop.xlane.xlu1 %133 }
  0xa2   :  { %v245_v43 = vadd.f32 %v213_v41, %v131_v42  ;;  %v246_v47 = vadd.f32 %v214_v45, %v134_v46  ;;  %v101_v41 = vmul.f32 %v1028_v3, %v62_v38  ;;  %v64_v42 = vld [vmem:[%s1531_s2 + $0xc8] sm:$0xff]  ;;  %v66_v45 = vld [vmem:[%s1531_s2 + $0xd8] sm:$0xff] }
  0xa4   :  { %733 = vperm.xlu0 %930, %v679_v32   ;;  %398 = vperm.xlu1 %929, %v242_v31   ;;  %v58_v31 = vld [vmem:[%s1531_s2 + $0x98] sm:$0xff]  ;;  %v159_v32 = vsel %vm110_vm0, %v94_v30, 0.0 }
  0xa5   :  { %v137_v50 = vpop.xlane.xlu0 %136  ;;  %v140_v54 = vpop.xlane.xlu1 %139  ;;  %v97_v33 = vmul.f32 %v1028_v3, %v58_v31 }
  0xa6   :  { %v247_v51 = vadd.f32 %v215_v49, %v137_v50  ;;  %v248_v55 = vadd.f32 %v216_v53, %v140_v54  ;;  %v105_v49 = vmul.f32 %v1028_v3, %v66_v45  ;;  %v68_v50 = vld [vmem:[%s1531_s2 + $0xe8] sm:$0xff] }
  0xa7   :  { %v107_v54 = vmul.f32 %v1028_v3, %v68_v50 }
  0xa8   :  { %738 = vperm.xlu0 %930, %v680_v36   ;;  %403 = vperm.xlu1 %929, %v243_v35   ;;  %v168_v36 = vsel %vm110_vm0, %v97_v33, 0.0  ;;  %v192_v53 = vsel %vm110_vm0, %v105_v49, 0.0 }
  0xa9   :  { %v143_v57 = vpop.xlane.xlu0 %142  ;;  %v146_v60 = vpop.xlane.xlu1 %145 }
  0xaa   :  { %v249_v58 = vadd.f32 %v217_v56, %v143_v57  ;;  %v250_v61 = vadd.f32 %v218_v59, %v146_v60  ;;  %v198_v56 = vsel %vm110_vm0, %v107_v54, 0.0 }
  0xac   :  { %743 = vperm.xlu0 %930, %v681_v40   ;;  %408 = vperm.xlu1 %929, %v244_v39   ;;  %v174_v40 = vsel %vm110_vm0, %v99_v37, 0.0 }
  0xad   :  { %v149_v63 = vpop.xlane.xlu0 %148  ;;  %v152_v2 = vpop.xlane.xlu1 %151 }
  0xae   :  { %v251_v0 = vadd.f32 %v219_v62, %v149_v63  ;;  %v252_v4 = vadd.f32 %v220_v1, %v152_v2 }
  0xb0   :  { %748 = vperm.xlu0 %930, %v682_v44   ;;  %413 = vperm.xlu1 %929, %v245_v43   ;;  %v180_v43 = vsel %vm110_vm0, %v101_v41, 0.0  ;;  %v103_v44 = vmul.f32 %v1028_v3, %v64_v42 }
  0xb1   :  { %v155_v6 = vpop.xlane.xlu0 %154  ;;  %v158_v9 = vpop.xlane.xlu1 %157 }
  0xb2   :  { %v253_v7 = vadd.f32 %v221_v5, %v155_v6  ;;  %v254_v10 = vadd.f32 %v222_v8, %v158_v9 }
  0xb4   :  { %753 = vperm.xlu0 %930, %v683_v48   ;;  %418 = vperm.xlu1 %929, %v246_v47   ;;  %v186_v48 = vsel %vm110_vm0, %v103_v44, 0.0 }
  0xb5   :  { %v689_v46 = vpop.permute.xlu1 %688 }
  0xb8   :  { %763 = vperm.xlu0 %930, %v685_v52   ;;  %423 = vperm.xlu1 %929, %v247_v51  }
  0xb9   :  { %v704_v35 = vpop.permute.xlu0 %703  ;;  %v694_v51 = vpop.permute.xlu1 %693 }
  0xbc   :  { %428 = vperm.xlu1 %929, %v248_v55   ;;  %v70_v55 = vld [vmem:[%s1531_s2 + $0xf8] sm:$0xff] }
  0xbd   :  { %v709_v39 = vpop.permute.xlu0 %708  ;;  %v109_v57 = vmul.f32 %v1028_v3, %v70_v55 }
  0xc0   :  { %433 = vperm.xlu1 %929, %v249_v58   ;;  %v699_v58 = vpop.permute.xlu1 %698 }
  0xc1   :  { %v714_v47 = vpop.permute.xlu0 %713 }
  0xc4   :  { %438 = vperm.xlu1 %929, %v250_v61   ;;  %v204_v61 = vsel %vm110_vm0, %v109_v57, 0.0 }
  0xc5   :  { %v719_v52 = vpop.permute.xlu0 %718 }
  0xc8   :  { %443 = vperm.xlu1 %929, %v251_v0  }
  0xcc   :  { %448 = vperm.xlu1 %929, %v252_v4  }
  0xd0   :  { %453 = vperm.xlu1 %929, %v253_v7  }
  0xd4   :  { %458 = vperm.xlu1 %929, %v254_v10  }
  0xd8   :  { %758 = vperm.xlu1 %929, %v684_v11  }
  0xdc   :  { %806 = vperm.xlu1 %929, %v803_v12  }
  0xe5   :  { %v893_v13 = vpop.f32.mrb[0].mxu0  ;;  %v1279_v15 = vpop.f32.mrb[0].mxu1 }
  0xe6   :  { %v575_v14 = vpop.f32.mrb[1].mxu0  ;;  %v1281_v16 = vpop.f32.mrb[1].mxu1 }
  0xe9   :  { %v1283_v17 = vpop.f32.mrb[2].mxu0  ;;  %v1285_v19 = vpop.f32.mrb[2].mxu1 }
  0xea   :  { %v585_v18 = vpop.f32.mrb[3].mxu0  ;;  %v1287_v20 = vpop.f32.mrb[3].mxu1 }
  0xed   :  { %v1289_v21 = vpop.f32.mrb[4].mxu0  ;;  %v1293_v23 = vpop.f32.mrb[4].mxu1 }
  0xee   :  { %v1291_v22 = vpop.f32.mrb[5].mxu0  ;;  %v1295_v24 = vpop.f32.mrb[5].mxu1 }
  0xf1   :  { %v1297_v25 = vpop.f32.mrb[6].mxu0  ;;  %v1301_v27 = vpop.f32.mrb[6].mxu1 }
  0xf2   :  { %v1299_v26 = vpop.f32.mrb[7].mxu0  ;;  %v1303_v28 = vpop.f32.mrb[7].mxu1 }
 0x100   :  { %160 = vadd.xlane.f32.xlu1 %v159_v32 }
 0x104   :  { %169 = vadd.xlane.f32.xlu1 %v168_v36 }
 0x108   :  { %175 = vadd.xlane.f32.xlu1 %v174_v40 }
 0x10c   :  { %181 = vadd.xlane.f32.xlu1 %v180_v43 }
 0x110   :  { %187 = vadd.xlane.f32.xlu1 %v186_v48 }
 0x114   :  { %193 = vadd.xlane.f32.xlu1 %v192_v53 }
 0x117   :  { %v384_v59 = vpop.permute.xlu0 %383 }
 0x118   :  { %v576_v60 = vadd.f32 %v575_v14, %v384_v59  ;;  %199 = vadd.xlane.f32.xlu1 %v198_v56 }
 0x11a   :  { %v654_v63 = vmax.f32 %v576_v60, 0.0 }
 0x11b   :  { %v389_v62 = vpop.permute.xlu1 %388  ;;  %v724_v33 = vpop.permute.xlu0 %723 }
 0x11c   :  { %v581_v0 = vadd.f32 %v893_v13, %v389_v62  ;;  %205 = vadd.xlane.f32.xlu1 %v204_v61  ;;  %v766_v4 = vmul.f32 %v689_v46, %v654_v63 }
 0x11e   :  { %v655_v1 = vmax.f32 %v581_v0, 0.0 }
 0x11f   :  { %v394_v2 = vpop.permute.xlu1 %393 }
 0x120   :  { %v767_v5 = vmul.f32 %v694_v51, %v655_v1  ;;  %v586_v6 = vadd.f32 %v585_v18, %v394_v2 }
 0x122   :  { %v782_v7 = vadd.f32 %v767_v5, %v766_v4  ;;  %v656_v8 = vmax.f32 %v586_v6, 0.0 }
 0x123   :  { %v399_v9 = vpop.permute.xlu1 %398 }
 0x124   :  { %v768_v10 = vmul.f32 %v699_v58, %v656_v8  ;;  %v591_v11 = vadd.f32 %v1283_v17, %v399_v9  ;;  %v729_v17 = vpop.permute.xlu0 %728 }
 0x126   :  { %v783_v12 = vadd.f32 %v782_v7, %v768_v10  ;;  %v657_v14 = vmax.f32 %v591_v11, 0.0 }
 0x127   :  { %v404_v29 = vpop.permute.xlu1 %403 }
 0x128   :  { %v769_v30 = vmul.f32 %v704_v35, %v657_v14  ;;  %v596_v31 = vadd.f32 %v1291_v22, %v404_v29  ;;  %v734_v49 = vpop.permute.xlu0 %733 }
 0x12a   :  { %v784_v32 = vadd.f32 %v783_v12, %v769_v30  ;;  %v658_v13 = vmax.f32 %v596_v31, 0.0 }
 0x12b   :  { %v409_v34 = vpop.permute.xlu1 %408 }
 0x12c   :  { %v770_v36 = vmul.f32 %v709_v39, %v658_v13  ;;  %v601_v37 = vadd.f32 %v1289_v21, %v409_v34  ;;  %v739_v55 = vpop.permute.xlu0 %738 }
 0x12e   :  { %v785_v18 = vadd.f32 %v784_v32, %v770_v36  ;;  %v659_v38 = vmax.f32 %v601_v37, 0.0 }
 0x12f   :  { %v414_v40 = vpop.permute.xlu1 %413 }
 0x130   :  { %v771_v41 = vmul.f32 %v714_v47, %v659_v38  ;;  %v606_v42 = vadd.f32 %v1299_v26, %v414_v40  ;;  %v744_v61 = vpop.permute.xlu0 %743 }
 0x132   :  { %v786_v43 = vadd.f32 %v785_v18, %v771_v41  ;;  %v660_v44 = vmax.f32 %v606_v42, 0.0 }
 0x133   :  { %v419_v45 = vpop.permute.xlu1 %418 }
 0x134   :  { %v772_v35 = vmul.f32 %v719_v52, %v660_v44  ;;  %v611_v22 = vadd.f32 %v1297_v25, %v419_v45  ;;  %v749_v5 = vpop.permute.xlu0 %748 }
 0x136   :  { %v787_v46 = vadd.f32 %v786_v43, %v772_v35  ;;  %v661_v48 = vmax.f32 %v611_v22, 0.0 }
 0x137   :  { %v424_v50 = vpop.permute.xlu1 %423 }
 0x138   :  { %v773_v39 = vmul.f32 %v724_v33, %v661_v48  ;;  %v616_v21 = vadd.f32 %v1281_v16, %v424_v50  ;;  %v754_v12 = vpop.permute.xlu0 %753  ;;  %v57_v50 = vld [vmem:[%s1531_s2 + $0x90] sm:$0xff] }
 0x13a   :  { %v788_v51 = vadd.f32 %v787_v46, %v773_v39  ;;  %v662_v53 = vmax.f32 %v616_v21, 0.0 }
 0x13b   :  { %v429_v54 = vpop.permute.xlu1 %428 }
 0x13c   :  { %v774_v47 = vmul.f32 %v729_v17, %v662_v53  ;;  %v621_v26 = vadd.f32 %v1279_v15, %v429_v54  ;;  %v764_v36 = vpop.permute.xlu0 %763  ;;  %v59_v53 = vld [vmem:[%s1531_s2 + $0xa0] sm:$0xff] }
 0x13e   :  { %v789_v56 = vadd.f32 %v788_v51, %v774_v47  ;;  %v663_v57 = vmax.f32 %v621_v26, 0.0  ;;  %v96_v51 = vmul.f32 %v1028_v3, %v57_v50  ;;  %v98_v47 = vmul.f32 %v1028_v3, %v59_v53  ;;  %v61_v26 = vld [vmem:[%s1531_s2 + $0xb0] sm:$0xff]  ;;  %v291_v53 = vld [vmem:[%s1535_s6 + $0x20] sm:$0xff] }
 0x13f   :  { %v434_v58 = vpop.permute.xlu1 %433 }
 0x140   :  { %v775_v52 = vmul.f32 %v734_v49, %v663_v57  ;;  %v626_v25 = vadd.f32 %v1287_v20, %v434_v58  ;;  %v165_v54 = vsel %vm110_vm0, %v96_v51, 0.0  ;;  %v63_v57 = vld [vmem:[%s1531_s2 + $0xc0] sm:$0xff] }
 0x142   :  { %v790_v59 = vadd.f32 %v789_v56, %v775_v52  ;;  %v664_v60 = vmax.f32 %v626_v25, 0.0  ;;  %v100_v56 = vmul.f32 %v1028_v3, %v61_v26  ;;  %v102_v52 = vmul.f32 %v1028_v3, %v63_v57  ;;  %v65_v25 = vld [vmem:[%s1531_s2 + $0xd0] sm:$0xff] }
 0x143   :  { %v439_v62 = vpop.permute.xlu1 %438 }
 0x144   :  { %v776_v63 = vmul.f32 %v739_v55, %v664_v60  ;;  %v631_v16 = vadd.f32 %v1285_v19, %v439_v62  ;;  %v171_v55 = vsel %vm110_vm0, %v98_v47, 0.0  ;;  %v177_v58 = vsel %vm110_vm0, %v100_v56, 0.0 }
 0x145   :  { %v104_v60 = vmul.f32 %v1028_v3, %v65_v25 }
 0x146   :  { %v791_v0 = vadd.f32 %v790_v59, %v776_v63  ;;  %v665_v1 = vmax.f32 %v631_v16, 0.0  ;;  %v183_v59 = vsel %vm110_vm0, %v102_v52, 0.0  ;;  %v69_v16 = vld [vmem:[%s1531_s2 + $0xf0] sm:$0xff]  ;;  %v234_v52 = vld [vmem:[%s1532_s3 + $0xd8] sm:$0xff] }
 0x147   :  { %v444_v2 = vpop.permute.xlu1 %443  ;;  %v189_v62 = vsel %vm110_vm0, %v104_v60, 0.0  ;;  %v294_v60 = vld [vmem:[%s1535_s6 + $0x38] sm:$0xff] }
 0x148   :  { %v777_v4 = vmul.f32 %v744_v61, %v665_v1  ;;  %v636_v15 = vadd.f32 %v1295_v24, %v444_v2  ;;  %v67_v61 = vld [vmem:[%s1531_s2 + $0xe0] sm:$0xff]  ;;  %v108_v1 = vmul.f32 %v1028_v3, %v69_v16  ;;  %v293_v16 = vld [vmem:[%s1535_s6 + $0x30] sm:$0xff] }
 0x149   :  { %v106_v63 = vmul.f32 %v1028_v3, %v67_v61 }
 0x14a   :  { %v792_v6 = vadd.f32 %v791_v0, %v777_v4  ;;  %v666_v7 = vmax.f32 %v636_v15, 0.0  ;;  %v201_v2 = vsel %vm110_vm0, %v108_v1, 0.0 }
 0x14b   :  { %v449_v8 = vpop.permute.xlu1 %448  ;;  %v195_v0 = vsel %vm110_vm0, %v106_v63, 0.0 }
 0x14c   :  { %v778_v9 = vmul.f32 %v749_v5, %v666_v7  ;;  %v641_v20 = vadd.f32 %v1293_v23, %v449_v8  ;;  %v809_v23 = vlaneseq  ;;  %v223_v5 = vld [vmem:[%s1532_s3 + $0x80] sm:$0xff]  ;;  %v226_v8 = vld [vmem:[%s1532_s3 + $0x98] sm:$0xff] }
 0x14e   :  { %v793_v10 = vadd.f32 %v792_v6, %v778_v9  ;;  %v667_v11 = vmax.f32 %v641_v20, 0.0  ;;  %v810_v42 = vshrl.u32 %v809_v23, 7  ;;  %v815_v45 = vand.u32 127, %v809_v23  ;;  %v230_v23 = vld [vmem:[%s1532_s3 + $0xb8] sm:$0xff] }
 0x14f   :  { %v454_v14 = vpop.permute.xlu1 %453 }
 0x150   :  { %v779_v29 = vmul.f32 %v754_v12, %v667_v11  ;;  %v646_v19 = vadd.f32 %v1303_v28, %v454_v14  ;;  %v811_v43 = vsub.s32 0, %v810_v42  ;;  %vm816_vm1 = vcmp.lt.s32.totalorder %v815_v45, 44  ;;  %v224_v11 = vld [vmem:[%s1532_s3 + $0x88] sm:$0xff]  ;;  %v287_v12 = vld [vmem:[%s1535_s6] sm:$0xff] }
 0x152   :  { %v794_v30 = vadd.f32 %v793_v10, %v779_v29  ;;  %v668_v13 = vmax.f32 %v646_v19, 0.0 }
 0x153   :  { %v459_v31 = vpop.permute.xlu1 %458 }
 0x154   :  { %v651_v32 = vadd.f32 %v1301_v27, %v459_v31  ;;  %v56_v27 = vld [vmem:[%s1531_s2 + $0x88] sm:$0xff] }
 0x155   :  { %v95_v49 = vmul.f32 %v1028_v3, %v56_v27 }
 0x156   :  { %v669_v24 = vmax.f32 %v651_v32, 0.0 }
 0x157   :  { %v759_v33 = vpop.permute.xlu1 %758  ;;  %v162_v21 = vsel %vm110_vm0, %v95_v49, 0.0  ;;  %v292_v49 = vld [vmem:[%s1535_s6 + $0x28] sm:$0xff] }
 0x158   :  { %v780_v34 = vmul.f32 %v759_v33, %v668_v13  ;;  %v781_v37 = vmul.f32 %v764_v36, %v669_v24  ;;  %v288_v13 = vld [vmem:[%s1535_s6 + $0x8] sm:$0xff]  ;;  %v225_v24 = vld [vmem:[%s1532_s3 + $0x90] sm:$0xff] }
 0x15a   :  { %v795_v18 = vadd.f32 %v794_v30, %v780_v34  ;;  %v228_v30 = vld [vmem:[%s1532_s3 + $0xa8] sm:$0xff] }
 0x15b   :  { %v807_v28 = vpop.permute.xlu1 %806 }
 0x15c   :  { %v796_v38 = vadd.f32 %v795_v18, %v781_v37  ;;  %v812_v22 = vrot.slane %v807_v28, %v811_v43  ;;  %v290_v37 = vld [vmem:[%s1535_s6 + $0x18] sm:$0xff] }
 0x15e   :  { %v797_v40 = vrot.slane %v796_v38, 4 }
 0x160   :  { %v798_v41 = vadd.f32 %v797_v40, %v796_v38 }
 0x162   :  { %v799_v17 = vrot.slane %v798_v41, 2 }
 0x164   :  { %v800_v44 = vadd.f32 %v799_v17, %v798_v41  ;;  %v289_v17 = vld [vmem:[%s1535_s6 + $0x10] sm:$0xff] }
 0x166   :  { %v801_v35 = vrot.slane %v800_v44, 1 }
 0x168   :  { %v802_v46 = vadd.f32 %v801_v35, %v800_v44  ;;  %v227_v44 = vld [vmem:[%s1532_s3 + $0xa0] sm:$0xff] }
 0x16a   :  { %v813_v48 = vadd.f32 %v812_v22, %v802_v46  ;;  %v232_v22 = vld [vmem:[%s1532_s3 + $0xc8] sm:$0xff] }
 0x16c   :  { %v817_v39 = vsel %vm816_vm1, %v813_v48, -1e+30 }
 0x16d   :  { %818 = vmax.xlane.f32.xlu0 %v817_v39 }
 0x171   :  { %163 = vadd.xlane.f32.xlu0 %v162_v21 }
 0x175   :  { %166 = vadd.xlane.f32.xlu0 %v165_v54  ;;  %v229_v54 = vld [vmem:[%s1532_s3 + $0xb0] sm:$0xff] }
 0x179   :  { %172 = vadd.xlane.f32.xlu0 %v171_v55 }
 0x17d   :  { %178 = vadd.xlane.f32.xlu0 %v177_v58 }
 0x181   :  { %184 = vadd.xlane.f32.xlu0 %v183_v59 }
 0x185   :  { %190 = vadd.xlane.f32.xlu0 %v189_v62 }
 0x189   :  { %196 = vadd.xlane.f32.xlu0 %v195_v0  ;;  %v231_v0 = vld [vmem:[%s1532_s3 + $0xc0] sm:$0xff] }
 0x18d   :  { %202 = vadd.xlane.f32.xlu0 %v201_v2  ;;  %v161_v4 = vpop.xlane.xlu1 %160 }
 0x18e   :  { %v255_v7 = vadd.f32 %v223_v5, %v161_v4 }
 0x190   :  { %v271_v3 = vmax.f32 %v255_v7, 0.0 }
 0x191   :  { %v170_v15 = vpop.xlane.xlu1 %169 }
 0x192   :  { %v258_v14 = vadd.f32 %v226_v8, %v170_v15  ;;  %v303_v32 = vmul.f32 %v287_v12, %v271_v3  ;;  %v296_v8 = vld [vmem:[%s1535_s6 + $0x48] sm:$0xff] }
 0x194   :  { %v274_v33 = vmax.f32 %v258_v14, 0.0  ;;  %v320_v41 = vsel %vm319_vm2, %v303_v32, 0.0  ;;  %v295_v14 = vld [vmem:[%s1535_s6 + $0x40] sm:$0xff] }
 0x195   :  { %v176_v6 = vpop.xlane.xlu1 %175 }
 0x196   :  { %v260_v18 = vadd.f32 %v228_v30, %v176_v6  ;;  %v306_v43 = vmul.f32 %v290_v37, %v274_v33  ;;  %v238_v37 = vld [vmem:[%s1532_s3 + $0xf8] sm:$0xff] }
 0x198   :  { %v276_v35 = vmax.f32 %v260_v18, 0.0  ;;  %v325_v51 = vsel %vm319_vm2, %v306_v43, 0.0  ;;  %v235_v43 = vld [vmem:[%s1532_s3 + $0xe0] sm:$0xff] }
 0x199   :  { %v182_v20 = vpop.xlane.xlu1 %181 }
 0x19a   :  { %v262_v27 = vadd.f32 %v230_v23, %v182_v20  ;;  %v308_v57 = vmul.f32 %v292_v49, %v276_v35 }
 0x19c   :  { %v278_v58 = vmax.f32 %v262_v27, 0.0  ;;  %v329_v5 = vsel %vm319_vm2, %v308_v57, 0.0 }
 0x19d   :  { %v188_v34 = vpop.xlane.xlu1 %187 }
 0x19e   :  { %v264_v47 = vadd.f32 %v232_v22, %v188_v34  ;;  %v310_v7 = vmul.f32 %v294_v60, %v278_v58  ;;  %v302_v58 = vld [vmem:[%s1535_s6 + $0x78] sm:$0xff]  ;;  %v301_v60 = vld [vmem:[%s1535_s6 + $0x70] sm:$0xff] }
 0x1a0   :  { %v280_v1 = vmax.f32 %v264_v47, 0.0  ;;  %v333_v32 = vsel %vm319_vm2, %v310_v7, 0.0 }
 0x1a1   :  { %v194_v50 = vpop.xlane.xlu1 %193 }
 0x1a2   :  { %v266_v2 = vadd.f32 %v234_v52, %v194_v50 }
 0x1a4   :  { %v282_v30 = vmax.f32 %v266_v2, 0.0 }
 0x1a5   :  { %v200_v4 = vpop.xlane.xlu1 %199 }
 0x1a9   :  { %v206_v18 = vpop.xlane.xlu1 %205 }
 0x1aa   :  { %v270_v35 = vadd.f32 %v238_v37, %v206_v18 }
 0x1fa   :  { %v819_v9 = vpop.xlane.xlu0 %818 }
 0x1fb   :  { %v820_v10 = vsub.f32 %v817_v39, %v819_v9 }
 0x1fd   :  { %v821_v29 = vmul.f32 1.442695, %v820_v10  ;;  %v236_v10 = vld [vmem:[%s1532_s3 + $0xe8] sm:$0xff] }
 0x1fe   :  { %v164_v19 = vpop.xlane.xlu0 %163  ;;  %v268_v33 = vadd.f32 %v236_v10, %v200_v4 }
 0x1ff   :  { %931 = vpow2.f32 %v821_v29  ;;  %v256_v31 = vadd.f32 %v224_v11, %v164_v19  ;;  %v312_v29 = vmul.f32 %v296_v8, %v280_v1  ;;  %v233_v19 = vld [vmem:[%s1532_s3 + $0xd0] sm:$0xff] }
 0x201   :  { %v272_v36 = vmax.f32 %v256_v31, 0.0 }
 0x202   :  { %v167_v38 = vpop.xlane.xlu0 %166 }
 0x203   :  { %v304_v40 = vmul.f32 %v288_v13, %v272_v36  ;;  %v257_v42 = vadd.f32 %v225_v24, %v167_v38  ;;  %v298_v24 = vld [vmem:[%s1535_s6 + $0x58] sm:$0xff] }
 0x205   :  { %v321_v28 = vsel %vm319_vm2, %v304_v40, 0.0  ;;  %v273_v45 = vmax.f32 %v257_v42, 0.0  ;;  %v297_v42 = vld [vmem:[%s1535_s6 + $0x50] sm:$0xff] }
 0x206   :  { %v322_v46 = vadd.f32 %v321_v28, %v320_v41  ;;  %v173_v48 = vpop.xlane.xlu0 %172  ;;  %v337_v41 = vsel %vm319_vm2, %v312_v29, 0.0 }
 0x207   :  { %v305_v39 = vmul.f32 %v289_v17, %v273_v45  ;;  %v259_v21 = vadd.f32 %v227_v44, %v173_v48  ;;  %v314_v17 = vmul.f32 %v298_v24, %v282_v30  ;;  %v284_v45 = vmax.f32 %v268_v33, 0.0 }
 0x209   :  { %v1446_v26 = vpop.eup %931  ;;  %v323_v55 = vsel %vm319_vm2, %v305_v39, 0.0  ;;  %v275_v56 = vmax.f32 %v259_v21, 0.0  ;;  %v341_v39 = vsel %vm319_vm2, %v314_v17, 0.0  ;;  %v299_v21 = vld [vmem:[%s1535_s6 + $0x60] sm:$0xff] }
 0x20a   :  { %823 = vadd.xlane.f32.xlu0 %v1446_v26  ;;  %v324_v25 = vadd.f32 %v323_v55, %v322_v46  ;;  %v179_v59 = vpop.xlane.xlu0 %178  ;;  %v300_v46 = vld [vmem:[%s1535_s6 + $0x68] sm:$0xff]  ;;  %v286_v55 = vmax.f32 %v270_v35, 0.0 }
 0x20b   :  { %v307_v61 = vmul.f32 %v291_v53, %v275_v56  ;;  %v261_v62 = vadd.f32 %v229_v54, %v179_v59  ;;  %v316_v47 = vmul.f32 %v300_v46, %v284_v45 }
 0x20c   :  { %v326_v63 = vadd.f32 %v325_v51, %v324_v25  ;;  %v237_v51 = vld [vmem:[%s1532_s3 + $0xf0] sm:$0xff]  ;;  %s960_s3 = smov [#allocation4]  }
 0x20d   :  { %v327_v15 = vsel %vm319_vm2, %v307_v61, 0.0  ;;  %v277_v6 = vmax.f32 %v261_v62, 0.0  ;;  %v345_v62 = vsel %vm319_vm2, %v316_v47, 0.0  ;;  %s836_s6 = sshll.u32 %s960_s3, 4  ;;  %s837_s6 = int_to_ptr.vmem [resolvable:$true] %s836_s6 }
 0x20e   :  { %v328_v9 = vadd.f32 %v327_v15, %v326_v63  ;;  %v185_v20 = vpop.xlane.xlu0 %184  ;;  %s935_s22 = scalar_lea.vmem %s837_s6, 16  ;;  %s939_s4 = scalar_lea.vmem %s837_s6, 32 }
 0x20f   :  { %v309_v3 = vmul.f32 %v293_v16, %v277_v6  ;;  %v263_v11 = vadd.f32 %v231_v0, %v185_v20  ;;  %v318_v16 = vmul.f32 %v302_v58, %v286_v55  ;;  %p936_p0 = scmp.ne.s32.totalorder %s837_s6, %s935_s22  ;;  %p940_p1 = scmp.lt.s32.totalorder %s837_s6, %s837_s6 }
 0x210   :  { %v330_v12 = vadd.f32 %v329_v5, %v328_v9  ;;  %p941_p2 = scmp.lt.s32.totalorder %s939_s4, %s935_s22 }
 0x211   :  { %v331_v31 = vsel %vm319_vm2, %v309_v3, 0.0  ;;  %v279_v13 = vmax.f32 %v263_v11, 0.0  ;;  %v349_v15 = vsel %vm319_vm2, %v318_v16, 0.0  ;;  %v357_v3 = vld [vmem:[#allocation3] sm:$0x1] }
 0x212   :  { %v332_v34 = vadd.f32 %v331_v31, %v330_v12  ;;  %v191_v36 = vpop.xlane.xlu0 %190  ;;  %p942_p3 = por %p941_p2, %p940_p1 }
 0x213   :  { %v311_v38 = vmul.f32 %v295_v14, %v279_v13  ;;  %v265_v23 = vadd.f32 %v233_v19, %v191_v36 }
 0x214   :  { %v334_v40 = vadd.f32 %v333_v32, %v332_v34  ;;  %p943_p4 = pnand %p942_p3, %p936_p0 }
 0x215   :  { %v335_v44 = vsel %vm319_vm2, %v311_v38, 0.0  ;;  %v281_v28 = vmax.f32 %v265_v23, 0.0 }
 0x216   :  { %v336_v27 = vadd.f32 %v335_v44, %v334_v40  ;;  %v197_v22 = vpop.xlane.xlu0 %196 }
 0x217   :  { %v313_v48 = vmul.f32 %v297_v42, %v281_v28  ;;  %v267_v49 = vadd.f32 %v235_v43, %v197_v22 }
 0x218   :  { %v338_v50 = vadd.f32 %v337_v41, %v336_v27 }
 0x219   :  { %v339_v53 = vsel %vm319_vm2, %v313_v48, 0.0  ;;  %v283_v54 = vmax.f32 %v267_v49, 0.0 }
 0x21a   :  { %v340_v56 = vadd.f32 %v339_v53, %v338_v50  ;;  %v203_v57 = vpop.xlane.xlu0 %202 }
 0x21b   :  { %v315_v52 = vmul.f32 %v299_v21, %v283_v54  ;;  %v269_v25 = vadd.f32 %v237_v51, %v203_v57 }
 0x21c   :  { %v342_v59 = vadd.f32 %v341_v39, %v340_v56 }
 0x21d   :  { %v343_v61 = vsel %vm319_vm2, %v315_v52, 0.0  ;;  %v285_v63 = vmax.f32 %v269_v25, 0.0 }
 0x21e   :  { %v344_v0 = vadd.f32 %v343_v61, %v342_v59 }
 0x21f   :  { %v317_v1 = vmul.f32 %v301_v60, %v285_v63 }
 0x220   :  { %v346_v2 = vadd.f32 %v345_v62, %v344_v0 }
 0x221   :  { %v347_v4 = vsel %vm319_vm2, %v317_v1, 0.0 }
 0x222   :  { %v348_v5 = vadd.f32 %v347_v4, %v346_v2 }
 0x224   :  { %v350_v6 = vadd.f32 %v349_v15, %v348_v5 }
 0x226   :  { %v351_v7 = vrot.slane %v350_v6, 4 }
 0x228   :  { %v352_v8 = vadd.f32 %v351_v7, %v350_v6 }
 0x22a   :  { %v353_v9 = vrot.slane %v352_v8, 2 }
 0x22c   :  { %v354_v20 = vadd.f32 %v353_v9, %v352_v8 }
 0x22e   :  { %v355_v10 = vrot.slane %v354_v20, 1 }
 0x230   :  { %v356_v11 = vadd.f32 %v355_v10, %v354_v20 }
 0x232   :  { %v358_v12 = vadd.f32 %v357_v3, %v356_v11 }
 0x234   :  { %360 = vst.msk [vmem:[#allocation4] sm:$0x1] %vm359_vm3, %v358_v12 }
 0x235   :  { %946 = shalt.err (!%p943_p4)
}
 0x236   :  { %s947_s23 = scalar_lea.hbm %s1538_s10, 16 }
 0x237   :  { %p948_p5 = scmp.ne.s32.totalorder %s1538_s10, %s947_s23  ;;  %p951_p6 = scmp.lt.u32.totalorder %s947_s23, %s1538_s10 }
 0x239   :  { %p953_p7 = pnand %p951_p6, %p948_p5 }
 0x23b   :  { %956 = shalt.err (!%p953_p7)
}
 0x23c   :  { %839 = dma.vmem_to_hbm [thread:$0]  %s837_s6, 16, %s1538_s10, [#allocation5]  }
 0x297   :  { %v824_v14 = vpop.xlane.xlu0 %823 }
 0x298   :  { %933 = vrcp.f32 %v824_v14 }
 0x2a2   :  { %v934_v29 = vpop.eup %933 }
 0x2a3   :  { %v826_v19 = vmul.f32 %v934_v29, %v1446_v26 }
 0x2a5   :  { %827 = vst [vmem:[%s1537_s9] sm:$0x1] %v826_v19 }
 0x2a6   :  { %957 = dma.done.wait [#allocation5], 16  }
 0x2a7   :  { %958 = vsyncadd [#allocation5], 4294967280 }
 0x2a8   :  { %845 = vsyncpa [#allocation5], 1 }

</bundles_post_ra>
